<compile_context>
chip_gen: v7x
topology: tpu7x:2x2x1
jax: 0.10.0
libtpu: 0.0.40
codegen_flags: <defaults>
</compile_context>

<pallas_src>
import jax
import jax.numpy as jnp
from jax.experimental import pallas as pl
from jax.experimental.pallas import tpu as pltpu

N_FEATURE = 3
N_HIDDEN = 20
N_OUTPUT = 3


def bpnet_kernel(xT_ref, w1_ref, b1_ref, w2_ref, b2_ref, outT_ref):
    # xT: (F, TB)  w1: (H, F)  b1: (H, 1)  w2: (O, H)  b2: (O, 1)  outT: (O, TB)
    xT = xT_ref[...]
    w1 = w1_ref[...]
    w2 = w2_ref[...]

    # Layer 1: Linear(3 -> 20) + ReLU on the VPU.  K=3 on the MXU would be all
    # latency / no throughput; three broadcast FMAs are cheaper.
    h = b1_ref[...]                                   # (H, 1)
    for k in range(N_FEATURE):                        # static unroll, K = 3
        h = h + w1[:, k:k + 1] * xT[k:k + 1, :]       # (H,1)*(1,TB) -> (H,TB)
    h = jnp.maximum(h, 0.0)

    # Layer 2: Linear(20 -> 3), also on the VPU (perf review: the degenerate
    # (3,20)@(20,TB) MXU dot can become the binding slot at large tiles while
    # running the MXU at <1% utilization).  20 broadcast FMAs leave the
    # vmatmul slot empty.
    # TODO(synk): re-audit per chip with a bundle dump; switch back to jnp.dot
    # if the per-k sublane broadcasts here end up binding on the XLU.
    logits = b2_ref[...]                              # (O, 1)
    for k in range(N_HIDDEN):                         # static unroll, K = 20
        logits = logits + w2[:, k:k + 1] * h[k:k + 1, :]   # -> (O, TB)

    # Softmax over the class axis (torch dim=1 == axis 0 in the ^T layout).
    m = jnp.max(logits, axis=0, keepdims=True)        # (1, TB)
    e = jnp.exp(logits - m)                           # EUP
    denom = jnp.sum(e, axis=0, keepdims=True)         # (1, TB)
    inv = 1.0 / denom                                 # exact (fixes row-sum==1)
    outT_ref[...] = (e * inv).astype(outT_ref.dtype)


def _clamp_tile(B, tile_b):
    """Lane-aligned batch tile; avoid over-padding tiny batches and keep >=2
    grid steps for moderately large batches (v7x megacore sharding)."""
    tile_b = max(128, 128 * (tile_b // 128))
    tile_b = min(tile_b, 128 * pl.cdiv(B, 128))
    if B > 256 and pl.cdiv(B, tile_b) < 2:
        tile_b = max(128, 128 * pl.cdiv(pl.cdiv(B, 2), 128))
    return tile_b


def bpnet_forward_fm(xT, w1, b1, w2, b2, *, tile_b=32768):
    """Feature-major forward: xT (n_feature, B) -> probs^T (n_output, B).

    Preferred entry point: batch lives on the lane axis end-to-end, so no
    wrapper transpose passes are needed (each one is an extra mem-bound HBM
    pass that can double end-to-end time for large B)."""
    F, B = xT.shape
    assert F == N_FEATURE
    tile_b = _clamp_tile(B, tile_b)
    grid = (pl.cdiv(B, tile_b),)   # ragged last tile handled by Pallas masking

    b1c = b1.reshape(N_HIDDEN, 1)
    b2c = b2.reshape(N_OUTPUT, 1)

    def resident(shape):
        # Full-array block, constant block index -> DMA'd once, VMEM-resident.
        return pl.BlockSpec(shape, lambda i: (0, 0))

    weight_bytes = 4 * (N_HIDDEN * N_FEATURE + N_HIDDEN
                        + N_OUTPUT * N_HIDDEN + N_OUTPUT)
    # ~330 B per batch column of VMEM (double-buffered x/out tiles + the
    # sublane-padded h / logits / softmax temps); add headroom and clip to a
    # ceiling that is safe on v7x (64 MiB physical) while unlocking >16 MiB
    # tiles on v5e (16 MiB scoped default).
    vmem_limit = int(min(max(384 * tile_b + (2 << 20), 16 << 20), 48 << 20))

    return pl.pallas_call(
        bpnet_kernel,
        out_shape=jax.ShapeDtypeStruct((N_OUTPUT, B), jnp.float32),
        grid=grid,
        in_specs=[
            pl.BlockSpec((N_FEATURE, tile_b), lambda i: (0, i)),   # streamed x^T
            resident((N_HIDDEN, N_FEATURE)),
            resident((N_HIDDEN, 1)),
            resident((N_OUTPUT, N_HIDDEN)),
            resident((N_OUTPUT, 1)),
        ],
        out_specs=pl.BlockSpec((N_OUTPUT, tile_b), lambda i: (0, i)),
        compiler_params=pltpu.CompilerParams(
            dimension_semantics=("parallel",),   # batch tiles are independent
            vmem_limit_bytes=vmem_limit,
        ),
        cost_estimate=pl.CostEstimate(
            flops=2 * B * (N_FEATURE * N_HIDDEN + N_HIDDEN * N_OUTPUT),
            transcendentals=B * N_OUTPUT,
            bytes_accessed=4 * B * (N_FEATURE + N_OUTPUT) + weight_bytes,
        ),
    )(xT, w1, b1c, w2, b2c)


def bpnet_forward(x, w1, b1, w2, b2, *, tile_b=32768):
    """Torch-layout interface: x (B, n_feature) -> probs (B, n_output).
    NOTE: this shim pays two extra mem-bound transpose passes (x.T and .T);
    prefer bpnet_forward_fm and keep activations feature-major in a larger
    graph."""
    return bpnet_forward_fm(x.T, w1, b1, w2, b2, tile_b=tile_b).T


def reference_forward(x, w1, b1, w2, b2):
    hp = jax.lax.Precision.HIGHEST
    h = jnp.maximum(jnp.dot(x, w1.T, precision=hp) + b1, 0.0)
    logits = jnp.dot(h, w2.T, precision=hp) + b2
    return jax.nn.softmax(logits, axis=1)


def bpnet_apply(x, w1, b1, w2, b2, *, min_kernel_batch=64, tile_b=32768):
    # Tiny batches: per-pallas_call overhead dwarfs ~1 us of work -> plain XLA.
    if x.shape[0] < min_kernel_batch:
        return reference_forward(x, w1, b1, w2, b2)
    return bpnet_forward(x, w1, b1, w2, b2, tile_b=tile_b)


def init_params(key):
    """Deterministic init matching torch.nn.Linear layouts: weight (out, in)."""
    k1, k2, k3, k4 = jax.random.split(key, 4)
    bound1 = 1.0 / jnp.sqrt(N_FEATURE)
    w1 = jax.random.uniform(k1, (N_HIDDEN, N_FEATURE), jnp.float32, -bound1, bound1)
    b1 = jax.random.uniform(k2, (N_HIDDEN,), jnp.float32, -bound1, bound1)
    bound2 = 1.0 / jnp.sqrt(N_HIDDEN)
    w2 = jax.random.uniform(k3, (N_OUTPUT, N_HIDDEN), jnp.float32, -bound2, bound2)
    b2 = jax.random.uniform(k4, (N_OUTPUT,), jnp.float32, -bound2, bound2)
    return w1, b1, w2, b2


if __name__ == "__main__":
    key = jax.random.PRNGKey(0)
    kx, kp = jax.random.split(key)

    # batch=200 is not a multiple of 128 lanes -> exercises the ragged-last-
    # tile path (no jnp.pad) both with a 2-step grid (tile_b=128) and a
    # single clamped tile (default tile_b).
    batch = 200
    x = jax.random.normal(kx, (batch, N_FEATURE), dtype=jnp.float32)
    w1, b1, w2, b2 = init_params(kp)

    ref = reference_forward(x, w1, b1, w2, b2)

    for tb in (128, 32768):
        out = bpnet_forward(x, w1, b1, w2, b2, tile_b=tb)
        out = jax.block_until_ready(out)
        assert out.shape == (batch, N_OUTPUT)
        assert jnp.allclose(out, ref, atol=1e-5, rtol=1e-5), (
            f"mismatch vs JAX reference (tile_b={tb})")
        assert jnp.allclose(jnp.sum(out, axis=1), 1.0, atol=1e-5), (
            f"softmax rows do not sum to 1 (tile_b={tb})")

    # Feature-major entry point (no wrapper transposes) gives the same result.
    out_fm = jax.block_until_ready(bpnet_forward_fm(x.T, w1, b1, w2, b2))
    assert jnp.allclose(out_fm.T, ref, atol=1e-5, rtol=1e-5)

    print("KERNEL_OK")
</pallas_src>

<mosaic_0001>
module attributes {stable_mosaic.version = 11 : i64} {
  func.func @bpnet_kernel(%arg0: i32, %arg1: memref<3x128xf32, #tpu.memory_space<vmem>>, %arg2: memref<20x3xf32, #tpu.memory_space<vmem>>, %arg3: memref<20x1xf32, #tpu.memory_space<vmem>>, %arg4: memref<3x20xf32, #tpu.memory_space<vmem>>, %arg5: memref<3x1xf32, #tpu.memory_space<vmem>>, %arg6: memref<3x128xf32, #tpu.memory_space<vmem>>) attributes {dimension_semantics = [#tpu.dimension_semantics<parallel>], iteration_bounds = array<i64: 2>, scalar_prefetch = 0 : i64, scratch_operands = 0 : i64, tpu.core_type = #tpu.core_type<tc>, window_params = [{transform_indices = @transform_0, window_bounds = array<i64: 3, 128>}, {pipeline_mode = #tpu.pipeline_mode<synchronous>, transform_indices = @transform_1, window_bounds = array<i64: 20, 3>}, {pipeline_mode = #tpu.pipeline_mode<synchronous>, transform_indices = @transform_2, window_bounds = array<i64: 20, 1>}, {pipeline_mode = #tpu.pipeline_mode<synchronous>, transform_indices = @transform_3, window_bounds = array<i64: 3, 20>}, {pipeline_mode = #tpu.pipeline_mode<synchronous>, transform_indices = @transform_4, window_bounds = array<i64: 3, 1>}, {transform_indices = @transform_5, window_bounds = array<i64: 3, 128>}]} {
    %c0 = arith.constant 0 : index
    %c0_0 = arith.constant 0 : index
    %0 = vector.load %arg1[%c0, %c0_0] : memref<3x128xf32, #tpu.memory_space<vmem>>, vector<3x128xf32>
    %c0_1 = arith.constant 0 : index
    %c0_2 = arith.constant 0 : index
    %1 = vector.load %arg2[%c0_1, %c0_2] : memref<20x3xf32, #tpu.memory_space<vmem>>, vector<20x3xf32>
    %c0_3 = arith.constant 0 : index
    %c0_4 = arith.constant 0 : index
    %2 = vector.load %arg4[%c0_3, %c0_4] : memref<3x20xf32, #tpu.memory_space<vmem>>, vector<3x20xf32>
    %c0_5 = arith.constant 0 : index
    %c0_6 = arith.constant 0 : index
    %3 = vector.load %arg3[%c0_5, %c0_6] : memref<20x1xf32, #tpu.memory_space<vmem>>, vector<20x1xf32>
    %4 = vector.extract_strided_slice %1 {offsets = [0, 0], sizes = [20, 1], strides = [1, 1]} : vector<20x3xf32> to vector<20x1xf32>
    %5 = vector.extract_strided_slice %0 {offsets = [0, 0], sizes = [1, 128], strides = [1, 1]} : vector<3x128xf32> to vector<1x128xf32>
    %6 = vector.broadcast %4 : vector<20x1xf32> to vector<20x128xf32>
    %7 = vector.broadcast %5 : vector<1x128xf32> to vector<20x128xf32>
    %8 = arith.mulf %6, %7 : vector<20x128xf32>
    %9 = vector.broadcast %3 : vector<20x1xf32> to vector<20x128xf32>
    %10 = arith.addf %9, %8 : vector<20x128xf32>
    %11 = vector.extract_strided_slice %1 {offsets = [0, 1], sizes = [20, 1], strides = [1, 1]} : vector<20x3xf32> to vector<20x1xf32>
    %12 = vector.extract_strided_slice %0 {offsets = [1, 0], sizes = [1, 128], strides = [1, 1]} : vector<3x128xf32> to vector<1x128xf32>
    %13 = vector.broadcast %11 : vector<20x1xf32> to vector<20x128xf32>
    %14 = vector.broadcast %12 : vector<1x128xf32> to vector<20x128xf32>
    %15 = arith.mulf %13, %14 : vector<20x128xf32>
    %16 = arith.addf %10, %15 : vector<20x128xf32>
    %17 = vector.extract_strided_slice %1 {offsets = [0, 2], sizes = [20, 1], strides = [1, 1]} : vector<20x3xf32> to vector<20x1xf32>
    %18 = vector.extract_strided_slice %0 {offsets = [2, 0], sizes = [1, 128], strides = [1, 1]} : vector<3x128xf32> to vector<1x128xf32>
    %19 = vector.broadcast %17 : vector<20x1xf32> to vector<20x128xf32>
    %20 = vector.broadcast %18 : vector<1x128xf32> to vector<20x128xf32>
    %21 = arith.mulf %19, %20 : vector<20x128xf32>
    %22 = arith.addf %16, %21 : vector<20x128xf32>
    %cst = arith.constant 0.000000e+00 : f32
    %23 = vector.broadcast %cst : f32 to vector<20x128xf32>
    %24 = arith.maximumf %22, %23 : vector<20x128xf32>
    %c0_7 = arith.constant 0 : index
    %c0_8 = arith.constant 0 : index
    %25 = vector.load %arg5[%c0_7, %c0_8] : memref<3x1xf32, #tpu.memory_space<vmem>>, vector<3x1xf32>
    %26 = vector.extract_strided_slice %2 {offsets = [0, 0], sizes = [3, 1], strides = [1, 1]} : vector<3x20xf32> to vector<3x1xf32>
    %27 = vector.extract_strided_slice %24 {offsets = [0, 0], sizes = [1, 128], strides = [1, 1]} : vector<20x128xf32> to vector<1x128xf32>
    %28 = vector.broadcast %26 : vector<3x1xf32> to vector<3x128xf32>
    %29 = vector.broadcast %27 : vector<1x128xf32> to vector<3x128xf32>
    %30 = arith.mulf %28, %29 : vector<3x128xf32>
    %31 = vector.broadcast %25 : vector<3x1xf32> to vector<3x128xf32>
    %32 = arith.addf %31, %30 : vector<3x128xf32>
    %33 = vector.extract_strided_slice %2 {offsets = [0, 1], sizes = [3, 1], strides = [1, 1]} : vector<3x20xf32> to vector<3x1xf32>
    %34 = vector.extract_strided_slice %24 {offsets = [1, 0], sizes = [1, 128], strides = [1, 1]} : vector<20x128xf32> to vector<1x128xf32>
    %35 = vector.broadcast %33 : vector<3x1xf32> to vector<3x128xf32>
    %36 = vector.broadcast %34 : vector<1x128xf32> to vector<3x128xf32>
    %37 = arith.mulf %35, %36 : vector<3x128xf32>
    %38 = arith.addf %32, %37 : vector<3x128xf32>
    %39 = vector.extract_strided_slice %2 {offsets = [0, 2], sizes = [3, 1], strides = [1, 1]} : vector<3x20xf32> to vector<3x1xf32>
    %40 = vector.extract_strided_slice %24 {offsets = [2, 0], sizes = [1, 128], strides = [1, 1]} : vector<20x128xf32> to vector<1x128xf32>
    %41 = vector.broadcast %39 : vector<3x1xf32> to vector<3x128xf32>
    %42 = vector.broadcast %40 : vector<1x128xf32> to vector<3x128xf32>
    %43 = arith.mulf %41, %42 : vector<3x128xf32>
    %44 = arith.addf %38, %43 : vector<3x128xf32>
    %45 = vector.extract_strided_slice %2 {offsets = [0, 3], sizes = [3, 1], strides = [1, 1]} : vector<3x20xf32> to vector<3x1xf32>
    %46 = vector.extract_strided_slice %24 {offsets = [3, 0], sizes = [1, 128], strides = [1, 1]} : vector<20x128xf32> to vector<1x128xf32>
    %47 = vector.broadcast %45 : vector<3x1xf32> to vector<3x128xf32>
    %48 = vector.broadcast %46 : vector<1x128xf32> to vector<3x128xf32>
    %49 = arith.mulf %47, %48 : vector<3x128xf32>
    %50 = arith.addf %44, %49 : vector<3x128xf32>
    %51 = vector.extract_strided_slice %2 {offsets = [0, 4], sizes = [3, 1], strides = [1, 1]} : vector<3x20xf32> to vector<3x1xf32>
    %52 = vector.extract_strided_slice %24 {offsets = [4, 0], sizes = [1, 128], strides = [1, 1]} : vector<20x128xf32> to vector<1x128xf32>
    %53 = vector.broadcast %51 : vector<3x1xf32> to vector<3x128xf32>
    %54 = vector.broadcast %52 : vector<1x128xf32> to vector<3x128xf32>
    %55 = arith.mulf %53, %54 : vector<3x128xf32>
    %56 = arith.addf %50, %55 : vector<3x128xf32>
    %57 = vector.extract_strided_slice %2 {offsets = [0, 5], sizes = [3, 1], strides = [1, 1]} : vector<3x20xf32> to vector<3x1xf32>
    %58 = vector.extract_strided_slice %24 {offsets = [5, 0], sizes = [1, 128], strides = [1, 1]} : vector<20x128xf32> to vector<1x128xf32>
    %59 = vector.broadcast %57 : vector<3x1xf32> to vector<3x128xf32>
    %60 = vector.broadcast %58 : vector<1x128xf32> to vector<3x128xf32>
    %61 = arith.mulf %59, %60 : vector<3x128xf32>
    %62 = arith.addf %56, %61 : vector<3x128xf32>
    %63 = vector.extract_strided_slice %2 {offsets = [0, 6], sizes = [3, 1], strides = [1, 1]} : vector<3x20xf32> to vector<3x1xf32>
    %64 = vector.extract_strided_slice %24 {offsets = [6, 0], sizes = [1, 128], strides = [1, 1]} : vector<20x128xf32> to vector<1x128xf32>
    %65 = vector.broadcast %63 : vector<3x1xf32> to vector<3x128xf32>
    %66 = vector.broadcast %64 : vector<1x128xf32> to vector<3x128xf32>
    %67 = arith.mulf %65, %66 : vector<3x128xf32>
    %68 = arith.addf %62, %67 : vector<3x128xf32>
    %69 = vector.extract_strided_slice %2 {offsets = [0, 7], sizes = [3, 1], strides = [1, 1]} : vector<3x20xf32> to vector<3x1xf32>
    %70 = vector.extract_strided_slice %24 {offsets = [7, 0], sizes = [1, 128], strides = [1, 1]} : vector<20x128xf32> to vector<1x128xf32>
    %71 = vector.broadcast %69 : vector<3x1xf32> to vector<3x128xf32>
    %72 = vector.broadcast %70 : vector<1x128xf32> to vector<3x128xf32>
    %73 = arith.mulf %71, %72 : vector<3x128xf32>
    %74 = arith.addf %68, %73 : vector<3x128xf32>
    %75 = vector.extract_strided_slice %2 {offsets = [0, 8], sizes = [3, 1], strides = [1, 1]} : vector<3x20xf32> to vector<3x1xf32>
    %76 = vector.extract_strided_slice %24 {offsets = [8, 0], sizes = [1, 128], strides = [1, 1]} : vector<20x128xf32> to vector<1x128xf32>
    %77 = vector.broadcast %75 : vector<3x1xf32> to vector<3x128xf32>
    %78 = vector.broadcast %76 : vector<1x128xf32> to vector<3x128xf32>
    %79 = arith.mulf %77, %78 : vector<3x128xf32>
    %80 = arith.addf %74, %79 : vector<3x128xf32>
    %81 = vector.extract_strided_slice %2 {offsets = [0, 9], sizes = [3, 1], strides = [1, 1]} : vector<3x20xf32> to vector<3x1xf32>
    %82 = vector.extract_strided_slice %24 {offsets = [9, 0], sizes = [1, 128], strides = [1, 1]} : vector<20x128xf32> to vector<1x128xf32>
    %83 = vector.broadcast %81 : vector<3x1xf32> to vector<3x128xf32>
    %84 = vector.broadcast %82 : vector<1x128xf32> to vector<3x128xf32>
    %85 = arith.mulf %83, %84 : vector<3x128xf32>
    %86 = arith.addf %80, %85 : vector<3x128xf32>
    %87 = vector.extract_strided_slice %2 {offsets = [0, 10], sizes = [3, 1], strides = [1, 1]} : vector<3x20xf32> to vector<3x1xf32>
    %88 = vector.extract_strided_slice %24 {offsets = [10, 0], sizes = [1, 128], strides = [1, 1]} : vector<20x128xf32> to vector<1x128xf32>
    %89 = vector.broadcast %87 : vector<3x1xf32> to vector<3x128xf32>
    %90 = vector.broadcast %88 : vector<1x128xf32> to vector<3x128xf32>
    %91 = arith.mulf %89, %90 : vector<3x128xf32>
    %92 = arith.addf %86, %91 : vector<3x128xf32>
    %93 = vector.extract_strided_slice %2 {offsets = [0, 11], sizes = [3, 1], strides = [1, 1]} : vector<3x20xf32> to vector<3x1xf32>
    %94 = vector.extract_strided_slice %24 {offsets = [11, 0], sizes = [1, 128], strides = [1, 1]} : vector<20x128xf32> to vector<1x128xf32>
    %95 = vector.broadcast %93 : vector<3x1xf32> to vector<3x128xf32>
    %96 = vector.broadcast %94 : vector<1x128xf32> to vector<3x128xf32>
    %97 = arith.mulf %95, %96 : vector<3x128xf32>
    %98 = arith.addf %92, %97 : vector<3x128xf32>
    %99 = vector.extract_strided_slice %2 {offsets = [0, 12], sizes = [3, 1], strides = [1, 1]} : vector<3x20xf32> to vector<3x1xf32>
    %100 = vector.extract_strided_slice %24 {offsets = [12, 0], sizes = [1, 128], strides = [1, 1]} : vector<20x128xf32> to vector<1x128xf32>
    %101 = vector.broadcast %99 : vector<3x1xf32> to vector<3x128xf32>
    %102 = vector.broadcast %100 : vector<1x128xf32> to vector<3x128xf32>
    %103 = arith.mulf %101, %102 : vector<3x128xf32>
    %104 = arith.addf %98, %103 : vector<3x128xf32>
    %105 = vector.extract_strided_slice %2 {offsets = [0, 13], sizes = [3, 1], strides = [1, 1]} : vector<3x20xf32> to vector<3x1xf32>
    %106 = vector.extract_strided_slice %24 {offsets = [13, 0], sizes = [1, 128], strides = [1, 1]} : vector<20x128xf32> to vector<1x128xf32>
    %107 = vector.broadcast %105 : vector<3x1xf32> to vector<3x128xf32>
    %108 = vector.broadcast %106 : vector<1x128xf32> to vector<3x128xf32>
    %109 = arith.mulf %107, %108 : vector<3x128xf32>
    %110 = arith.addf %104, %109 : vector<3x128xf32>
    %111 = vector.extract_strided_slice %2 {offsets = [0, 14], sizes = [3, 1], strides = [1, 1]} : vector<3x20xf32> to vector<3x1xf32>
    %112 = vector.extract_strided_slice %24 {offsets = [14, 0], sizes = [1, 128], strides = [1, 1]} : vector<20x128xf32> to vector<1x128xf32>
    %113 = vector.broadcast %111 : vector<3x1xf32> to vector<3x128xf32>
    %114 = vector.broadcast %112 : vector<1x128xf32> to vector<3x128xf32>
    %115 = arith.mulf %113, %114 : vector<3x128xf32>
    %116 = arith.addf %110, %115 : vector<3x128xf32>
    %117 = vector.extract_strided_slice %2 {offsets = [0, 15], sizes = [3, 1], strides = [1, 1]} : vector<3x20xf32> to vector<3x1xf32>
    %118 = vector.extract_strided_slice %24 {offsets = [15, 0], sizes = [1, 128], strides = [1, 1]} : vector<20x128xf32> to vector<1x128xf32>
    %119 = vector.broadcast %117 : vector<3x1xf32> to vector<3x128xf32>
    %120 = vector.broadcast %118 : vector<1x128xf32> to vector<3x128xf32>
    %121 = arith.mulf %119, %120 : vector<3x128xf32>
    %122 = arith.addf %116, %121 : vector<3x128xf32>
    %123 = vector.extract_strided_slice %2 {offsets = [0, 16], sizes = [3, 1], strides = [1, 1]} : vector<3x20xf32> to vector<3x1xf32>
    %124 = vector.extract_strided_slice %24 {offsets = [16, 0], sizes = [1, 128], strides = [1, 1]} : vector<20x128xf32> to vector<1x128xf32>
    %125 = vector.broadcast %123 : vector<3x1xf32> to vector<3x128xf32>
    %126 = vector.broadcast %124 : vector<1x128xf32> to vector<3x128xf32>
    %127 = arith.mulf %125, %126 : vector<3x128xf32>
    %128 = arith.addf %122, %127 : vector<3x128xf32>
    %129 = vector.extract_strided_slice %2 {offsets = [0, 17], sizes = [3, 1], strides = [1, 1]} : vector<3x20xf32> to vector<3x1xf32>
    %130 = vector.extract_strided_slice %24 {offsets = [17, 0], sizes = [1, 128], strides = [1, 1]} : vector<20x128xf32> to vector<1x128xf32>
    %131 = vector.broadcast %129 : vector<3x1xf32> to vector<3x128xf32>
    %132 = vector.broadcast %130 : vector<1x128xf32> to vector<3x128xf32>
    %133 = arith.mulf %131, %132 : vector<3x128xf32>
    %134 = arith.addf %128, %133 : vector<3x128xf32>
    %135 = vector.extract_strided_slice %2 {offsets = [0, 18], sizes = [3, 1], strides = [1, 1]} : vector<3x20xf32> to vector<3x1xf32>
    %136 = vector.extract_strided_slice %24 {offsets = [18, 0], sizes = [1, 128], strides = [1, 1]} : vector<20x128xf32> to vector<1x128xf32>
    %137 = vector.broadcast %135 : vector<3x1xf32> to vector<3x128xf32>
    %138 = vector.broadcast %136 : vector<1x128xf32> to vector<3x128xf32>
    %139 = arith.mulf %137, %138 : vector<3x128xf32>
    %140 = arith.addf %134, %139 : vector<3x128xf32>
    %141 = vector.extract_strided_slice %2 {offsets = [0, 19], sizes = [3, 1], strides = [1, 1]} : vector<3x20xf32> to vector<3x1xf32>
    %142 = vector.extract_strided_slice %24 {offsets = [19, 0], sizes = [1, 128], strides = [1, 1]} : vector<20x128xf32> to vector<1x128xf32>
    %143 = vector.broadcast %141 : vector<3x1xf32> to vector<3x128xf32>
    %144 = vector.broadcast %142 : vector<1x128xf32> to vector<3x128xf32>
    %145 = arith.mulf %143, %144 : vector<3x128xf32>
    %146 = arith.addf %140, %145 : vector<3x128xf32>
    %cst_9 = arith.constant dense<0xFF800000> : vector<128xf32>
    %147 = vector.multi_reduction <maximumf>, %146, %cst_9 [0] : vector<3x128xf32> to vector<128xf32>
    %148 = vector.shape_cast %147 : vector<128xf32> to vector<1x128xf32>
    %149 = vector.broadcast %148 : vector<1x128xf32> to vector<3x128xf32>
    %150 = arith.subf %146, %149 : vector<3x128xf32>
    %151 = math.exp %150 : vector<3x128xf32>
    %cst_10 = arith.constant dense<0.000000e+00> : vector<128xf32>
    %152 = vector.multi_reduction <add>, %151, %cst_10 [0] : vector<3x128xf32> to vector<128xf32>
    %153 = vector.shape_cast %152 : vector<128xf32> to vector<1x128xf32>
    %cst_11 = arith.constant 1.000000e+00 : f32
    %154 = vector.broadcast %cst_11 : f32 to vector<1x128xf32>
    %155 = arith.divf %154, %153 : vector<1x128xf32>
    %156 = vector.broadcast %155 : vector<1x128xf32> to vector<3x128xf32>
    %157 = arith.mulf %151, %156 : vector<3x128xf32>
    %c0_12 = arith.constant 0 : index
    %c0_13 = arith.constant 0 : index
    %158 = vector.load %arg6[%c0_12, %c0_13] : memref<3x128xf32, #tpu.memory_space<vmem>>, vector<3x128xf32>
    tpu.vector_store %arg6[%c0_12, %c0_13], %157 {strides = array<i32>} : memref<3x128xf32, #tpu.memory_space<vmem>>, vector<3x128xf32>,
    return
  }
  func.func @transform_0(%arg0: i32) -> (i32, i32) {
    %c0_i32 = arith.constant 0 : i32
    %c0_i32_0 = arith.constant 0 : i32
    return %c0_i32, %arg0 : i32, i32
  }
  func.func @transform_1(%arg0: i32) -> (i32, i32) {
    %c0_i32 = arith.constant 0 : i32
    %c0_i32_0 = arith.constant 0 : i32
    %c0_i32_1 = arith.constant 0 : i32
    return %c0_i32, %c0_i32_0 : i32, i32
  }
  func.func @transform_2(%arg0: i32) -> (i32, i32) {
    %c0_i32 = arith.constant 0 : i32
    %c0_i32_0 = arith.constant 0 : i32
    %c0_i32_1 = arith.constant 0 : i32
    return %c0_i32, %c0_i32_0 : i32, i32
  }
  func.func @transform_3(%arg0: i32) -> (i32, i32) {
    %c0_i32 = arith.constant 0 : i32
    %c0_i32_0 = arith.constant 0 : i32
    %c0_i32_1 = arith.constant 0 : i32
    return %c0_i32, %c0_i32_0 : i32, i32
  }
  func.func @transform_4(%arg0: i32) -> (i32, i32) {
    %c0_i32 = arith.constant 0 : i32
    %c0_i32_0 = arith.constant 0 : i32
    %c0_i32_1 = arith.constant 0 : i32
    return %c0_i32, %c0_i32_0 : i32, i32
  }
  func.func @transform_5(%arg0: i32) -> (i32, i32) {
    %c0_i32 = arith.constant 0 : i32
    %c0_i32_0 = arith.constant 0 : i32
    return %c0_i32, %arg0 : i32, i32
  }
}

</mosaic_0001>

<bundles_post_ra>
// kernel: tpu_custom_call.1
= control target key start
LH: loop header
LB: loop body
LE: loop exit
PB: predicated region body
PF: predicated region fallthrough
CT: control target
= control target key end

     0   :  { %10 = vsyncpa [#allocation3], 0  ;;  %s1033_s0 = inlined_call_operand.vmem [shape: f32[3,200], index: 0, kind: input, shape index: {}]   ;;  %s1034_s1 = inlined_call_operand.vmem [shape: f32[20,3], index: 1, kind: input, shape index: {}]   ;;  %s1035_s2 = inlined_call_operand.vmem [shape: f32[20,1], index: 2, kind: input, shape index: {}]   ;;  %s1036_s3 = inlined_call_operand.vmem [shape: f32[3,20], index: 3, kind: input, shape index: {}]   ;;  %s1037_s4 = inlined_call_operand.vmem [shape: f32[3,1], index: 4, kind: input, shape index: {}]   ;;  %s1038_s5 = inlined_call_operand.hbm [shape: f32[3,200], index: 5, kind: output, shape index: {}]  }
   0x1   :  { %12 = vsyncpa [#allocation3 + $0x1], 0  ;;  %s835_s18 = smov 0   ;;  %s837_s19 = smov 0  }
   0x2   :  { %s839_s20 = smov 0   ;;  %s841_s21 = smov 0  }
   0x3 LB: > { %s856_s22 = sadd.s32 4294967295, %s782_s21   ;;  %s617_s23 = sadd.s32 4294967294, %s782_s21   ;;  %s782_s21 = sphi %s841_s21, %s1044_s21   ;;  %s778_s20 = sphi %s839_s20, %s1043_s20   ;;  %s774_s19 = sphi %s837_s19, %s1042_s19   ;;  %s770_s18 = sphi %s835_s18, %s1041_s18  }
   0x4   : > { %s860_s24 = sadd.s32 1, %s782_s21   ;;  %s135_s25 = sadd.s32 1, %s778_s20 }
   0x5   : > { %s132_s26 = ssub.s32 %s782_s21, %s860_s24  ;;  %p145_p0 = scmp.ne.s32.totalorder %s778_s20, %s774_s19 }
   0x6   : > { %p133_p1 = scmp.eq.s32.totalorder %s132_s26, 0  ;;  %p146_p2 = scmp.eq.s32.totalorder %s856_s22, 1 }
   0x7   : > { %p151_p3 = scmp.ne.s32.totalorder %s774_s19, %s770_s18  ;;  %p152_p4 = scmp.eq.s32.totalorder %s617_s23, 1 }
   0x8   : > { %s871_s27 = scalar_select %p133_p1, %s778_s20, %s135_s25  }
   0x9   : > { %p873_p5 = por %p146_p2, %p145_p0  ;;  %p877_p6 = por %p152_p4, %p151_p3 }
   0xa   : > { %p620_p7 = scmp.ge.s32.totalorder %s782_s21, 1  ;;  %p189_p8 = scmp.lt.s32.totalorder %s782_s21, 3 }
   0xc   : > { %p190_p9 = pnand %p620_p7, %p189_p8 }
   0xd   : > { %v221_v0 = vld [vmem:[%s1034_s1] sm:$0xff] (!%p190_p9)  ;;  %v784_v1 = vmov (!%p190_p9), 1   ;;  %v785_v2 = vmov (!%p190_p9), 0   ;;  %v786_v4 = vmov (!%p190_p9), 2   ;;  %v222_v7 = vld [vmem:[%s1034_s1 + $0x8] sm:$0xff] (!%p190_p9)  ;;  %v787_v8 = vmov (!%p190_p9), 6  }
   0xe   : > { %193 = sbr.rel (%p190_p9) target bundleno = 314 (0x13a), region = 40  ;;  %687 = vset.pattern.permute.xlu1 (!%p190_p9), %v784_v1  ;;  %686 = vset.pattern.permute.xlu0 (!%p190_p9), %v785_v2  ;;  %v225_v3 = vld [vmem:[%s1035_s2] sm:$0xff] (!%p190_p9)  ;;  %v788_v9 = vmov (!%p190_p9), 9   ;;  %v789_v10 = vmov (!%p190_p9), 3   ;;  %v226_v11 = vld [vmem:[%s1035_s2 + $0x8] sm:$0xff] (!%p190_p9)  ;;  %v790_v12 = vmov (!%p190_p9), 4   ;;  %v243_v29 = vlaneseq (!%p190_p9) }
   0xf   : > { %269 = vperm.xlu1 (!%p190_p9), %687, %v221_v0   ;;  %230 = vperm.xlu0 (!%p190_p9), %686, %v221_v0   ;;  %v893_v5 = vld [vmem:[%s1036_s3] sm:$0x7] (!%p190_p9)  ;;  %v227_v13 = vld [vmem:[%s1035_s2 + $0x10] sm:$0xf] (!%p190_p9)  ;;  %v791_v14 = vmov (!%p190_p9), 5   ;;  %v792_v16 = vmov (!%p190_p9), 7  }
  0x10   : > { %v315_v6 = vld [vmem:[%s1037_s4] sm:$0x7] (!%p190_p9)  ;;  %v223_v15 = vld [vmem:[%s1034_s1 + $0x10] sm:$0xf] (!%p190_p9)  ;;  %v793_v17 = vmov (!%p190_p9), 14   ;;  %v794_v18 = vmov (!%p190_p9), 8  }
  0x11   : > { %v795_v19 = vmov (!%p190_p9), 17   ;;  %v796_v20 = vmov (!%p190_p9), 19   ;;  %v797_v21 = vmov (!%p190_p9), 10   ;;  %v798_v22 = vmov (!%p190_p9), 11   ;;  %p216_p10 = scmp.lt.s32.totalorder (!%p190_p9), %s856_s22, 1  ;;  %s213_s10 = sand.u32 (!%p190_p9), 1, %s774_s19  }
  0x12   : > { %v799_v23 = vmov (!%p190_p9), 12   ;;  %v800_v24 = vmov (!%p190_p9), 13   ;;  %v801_v25 = vmov (!%p190_p9), 15   ;;  %v802_v26 = vmov (!%p190_p9), 16   ;;  %s621_s11 = sshll.u32 (!%p190_p9), %s213_s10, 2  ;;  %s624_s12 = sshll.u32 (!%p190_p9), %s856_s22, 6 }
  0x13   : > { %688 = vset.pattern.permute.xlu1 (!%p190_p9), %v786_v4  ;;  %252 = vperm.xlu0 (!%p190_p9), %686, %v225_v3   ;;  %v803_v27 = vmov (!%p190_p9), 18   ;;  %v935_v32 = vshrl.u32 (!%p190_p9), %v243_v29, 7  ;;  %vm522_vm0 = vcmask (!%p190_p9), 1042432   ;;  %s215_s13 = scalar_lea.vmem (!%p190_p9), [#allocation2], %s621_s11  ;;  %s991_s17 = scalar_lea.hbm (!%p190_p9), %s1038_s5, %s624_s12 }
  0x14   : > { %291 = vperm.xlu1 (!%p190_p9), %688, %v221_v0   ;;  %s558_s14 = sshll.u32 (!%p190_p9), %s215_s13, 4  ;;  %s545_s23 = scalar_lea.sflag (!%p190_p9), [#allocation3], %s213_s10  ;;  %s993_s14 = int_to_ptr.vmem [resolvable:$true] %s558_s14 }
  0x15   : > { %s217_s30 = scalar_select %p216_p10, %s856_s22, 1  ;;  %v941_v33 = vsub.s32 0, %v935_v32  ;;  %v947_v39 = vsub.s32 1, %v935_v32  ;;  %v951_v42 = vsub.s32 2, %v935_v32  ;;  %v965_v3 = vsub.s32 3, %v935_v32 }
  0x16   : > { %s720_s25 = scalar_lea.vmem %s993_s14, 64  ;;  %s804_s22 = smov [#allocation2]  }
  0x17   : > { %318 = vperm.xlu0 %686, %v893_v5   ;;  %s622_s6 = sshll.u32 %s217_s30, 2  ;;  %p721_p11 = scmp.ne.s32.totalorder %s993_s14, %s720_s25 }
  0x18   : > { %689 = vset.pattern.permute.xlu1 %v785_v2  ;;  %s219_s9 = scalar_lea.vmem %s1033_s0, %s622_s6  ;;  %s724_s26 = sshll.u32 %s804_s22, 4  ;;  %s725_s26 = int_to_ptr.vmem [resolvable:$false] %s724_s26 }
  0x19   : > { %328 = vperm.xlu1 %689, %v315_v6   ;;  %v220_v35 = vld [vmem:[%s219_s9] sm:$0x7]  ;;  %p722_p12 = pnand %p721_p11, %p873_p5  ;;  %s726_s30 = scalar_lea.vmem %s725_s26, 128 }
  0x1a   : > { %v944_v37 = vrot.slane %v220_v35, %v941_v33  ;;  %v954_v44 = vrot.slane %v220_v35, %v947_v39  ;;  %v957_v46 = vrot.slane %v220_v35, %v951_v42  ;;  %p727_p0 = scmp.lt.s32.totalorder %s993_s14, %s725_s26  ;;  %p728_p1 = scmp.lt.s32.totalorder %s726_s30, %s720_s25 }
  0x1b   : > { %690 = vset.pattern.permute.xlu0 %v784_v1  ;;  %p723_p13 = pneg %p722_p12 }
  0x1c   : > { %333 = vperm.xlu0 %690, %v893_v5   ;;  %p729_p2 = por %p728_p1, %p727_p0 }
  0x1d   : > { %235 = vperm.xlu1 %689, %v222_v7  }
  0x1e   : > { %p730_p3 = pnand %p729_p2, %p723_p13 }
  0x20   : > { %694 = vset.pattern.permute.xlu0 %v786_v4 }
  0x21   : > { %691 = vset.pattern.permute.xlu1 %v786_v4  ;;  %295 = vperm.xlu0 %694, %v222_v7  }
  0x22   : > { %343 = vperm.xlu1 %691, %v893_v5  }
  0x25   : > { %697 = vset.pattern.permute.xlu0 %v787_v8  ;;  %v378_v8 = vsub.s32 5, %v935_v32 }
  0x26   : > { %692 = vset.pattern.permute.xlu1 %v784_v1  ;;  %383 = vperm.xlu0 %697, %v893_v5  }
  0x27   : > { %273 = vperm.xlu1 %692, %v222_v7   ;;  %v368_v7 = vsub.s32 4, %v935_v32 }
  0x2a   : > { %700 = vset.pattern.permute.xlu0 %v788_v9 }
  0x2b   : > { %693 = vset.pattern.permute.xlu1 %v789_v10  ;;  %413 = vperm.xlu0 %700, %v893_v5  }
  0x2c   : > { %353 = vperm.xlu1 %693, %v893_v5  }
  0x2f   : > { %701 = vset.pattern.permute.xlu0 %v785_v2 }
  0x30   : > { %695 = vset.pattern.permute.xlu1 %v790_v12  ;;  %257 = vperm.xlu0 %701, %v226_v11  }
  0x31   : > { %363 = vperm.xlu1 %695, %v893_v5  }
  0x34   : > { %262 = vperm.xlu0 %701, %v227_v13  }
  0x35   : > { %696 = vset.pattern.permute.xlu1 %v791_v14 }
  0x36   : > { %373 = vperm.xlu1 %696, %v893_v5  }
  0x38   : > { %706 = vset.pattern.permute.xlu0 %v786_v4 }
  0x39   : > { %299 = vperm.xlu0 %706, %v223_v15  }
  0x3a   : > { %698 = vset.pattern.permute.xlu1 %v792_v16 }
  0x3b   : > { %393 = vperm.xlu1 %698, %v893_v5  }
  0x3d   : > { %709 = vset.pattern.permute.xlu0 %v793_v17 }
  0x3e   : > { %463 = vperm.xlu0 %709, %v893_v5  }
  0x3f   : > { %699 = vset.pattern.permute.xlu1 %v794_v18 }
  0x40   : > { %403 = vperm.xlu1 %699, %v893_v5  }
  0x42   : > { %712 = vset.pattern.permute.xlu0 %v795_v19 }
  0x43   : > { %493 = vperm.xlu0 %712, %v893_v5  }
  0x44   : > { %702 = vset.pattern.permute.xlu1 %v785_v2 }
  0x45   : > { %240 = vperm.xlu1 %702, %v223_v15  }
  0x47   : > { %715 = vset.pattern.permute.xlu0 %v796_v20 }
  0x49   : > { %703 = vset.pattern.permute.xlu1 %v797_v21 }
  0x4a   : > { %423 = vperm.xlu1 %703, %v893_v5  }
  0x4e   : > { %704 = vset.pattern.permute.xlu1 %v784_v1 }
  0x4f   : > { %277 = vperm.xlu1 %704, %v223_v15  }
  0x53   : > { %705 = vset.pattern.permute.xlu1 %v798_v22  ;;  %v388_v22 = vsub.s32 6, %v935_v32 }
  0x54   : > { %433 = vperm.xlu1 %705, %v893_v5  }
  0x58   : > { %707 = vset.pattern.permute.xlu1 %v799_v23 }
  0x59   : > { %443 = vperm.xlu1 %707, %v893_v5  }
  0x5d   : > { %708 = vset.pattern.permute.xlu1 %v800_v24 }
  0x5e   : > { %453 = vperm.xlu1 %708, %v893_v5  }
  0x62   : > { %710 = vset.pattern.permute.xlu1 %v801_v25 }
  0x63   : > { %473 = vperm.xlu1 %710, %v893_v5  }
  0x67   : > { %711 = vset.pattern.permute.xlu1 %v802_v26 }
  0x68   : > { %483 = vperm.xlu1 %711, %v893_v5  }
  0x6c   : > { %713 = vset.pattern.permute.xlu1 %v803_v27  ;;  %v398_v27 = vsub.s32 7, %v935_v32 }
  0x6d   : > { %503 = vperm.xlu1 %713, %v893_v5  }
  0x71   : > { %714 = vset.pattern.permute.xlu1 %v796_v20 }
  0x72   : > { %513 = vperm.xlu1 %714, %v893_v5  }
  0x8e   : > { %v270_v28 = vpop.permute.xlu1 %269  ;;  %v231_v31 = vpop.permute.xlu0 %230 }
  0x8f   : > { %v247_v41 = vmul.f32 %v944_v37, %v231_v31  ;;  %v284_v48 = vmul.f32 %v954_v44, %v270_v28 }
  0x92   : > { %v253_v36 = vpop.permute.xlu0 %252 }
  0x93   : > { %v292_v30 = vpop.permute.xlu1 %291  ;;  %v265_v45 = vadd.f32 %v253_v36, %v247_v41 }
  0x94   : > { %v306_v51 = vmul.f32 %v957_v46, %v292_v30 }
  0x95   : > { %v287_v50 = vadd.f32 %v284_v48, %v265_v45 }
  0x96   : > { %v319_v40 = vpop.permute.xlu0 %318 }
  0x97   : > { %v309_v54 = vadd.f32 %v306_v51, %v287_v50 }
  0x98   : > { %v329_v34 = vpop.permute.xlu1 %328 }
  0x99   : > { %v312_v55 = vmax.f32 %v309_v54, 0.0 }
  0x9b   : > { %v334_v47 = vpop.permute.xlu0 %333  ;;  %v324_v58 = vrot.slane %v312_v55, %v941_v33  ;;  %v339_v62 = vrot.slane %v312_v55, %v947_v39  ;;  %v349_v5 = vrot.slane %v312_v55, %v951_v42  ;;  %v359_v13 = vrot.slane %v312_v55, %v965_v3 }
  0x9c   : > { %v236_v38 = vpop.permute.xlu1 %235  ;;  %v369_v17 = vrot.slane %v312_v55, %v368_v7  ;;  %v379_v20 = vrot.slane %v312_v55, %v378_v8  ;;  %v389_v29 = vrot.slane %v312_v55, %v388_v22  ;;  %v399_v35 = vrot.slane %v312_v55, %v398_v27 }
  0x9d   : > { %v325_v61 = vmul.f32 %v324_v58, %v319_v40  ;;  %v248_v2 = vmul.f32 %v944_v37, %v236_v38  ;;  %v340_v4 = vmul.f32 %v339_v62, %v334_v47 }
  0x9f   : > { %v331_v1 = vadd.f32 %v329_v34, %v325_v61 }
  0xa0   : > { %v296_v52 = vpop.permute.xlu0 %295 }
  0xa1   : > { %v344_v43 = vpop.permute.xlu1 %343  ;;  %v341_v10 = vadd.f32 %v340_v4, %v331_v1  ;;  %v307_v14 = vmul.f32 %v957_v46, %v296_v52 }
  0xa2   : > { %v350_v11 = vmul.f32 %v349_v5, %v344_v43 }
  0xa4   : > { %v351_v18 = vadd.f32 %v350_v11, %v341_v10 }
  0xa5   : > { %v384_v57 = vpop.permute.xlu0 %383 }
  0xa6   : > { %v274_v49 = vpop.permute.xlu1 %273  ;;  %v390_v34 = vmul.f32 %v389_v29, %v384_v57 }
  0xa7   : > { %v285_v12 = vmul.f32 %v954_v44, %v274_v49 }
  0xaa   : > { %v414_v59 = vpop.permute.xlu0 %413 }
  0xab   : > { %v354_v53 = vpop.permute.xlu1 %353 }
  0xac   : > { %v360_v15 = vmul.f32 %v359_v13, %v354_v53 }
  0xae   : > { %v361_v23 = vadd.f32 %v360_v15, %v351_v18 }
  0xaf   : > { %v258_v0 = vpop.permute.xlu0 %257 }
  0xb0   : > { %v364_v56 = vpop.permute.xlu1 %363  ;;  %v266_v6 = vadd.f32 %v258_v0, %v248_v2 }
  0xb1   : > { %v370_v19 = vmul.f32 %v369_v17, %v364_v56 }
  0xb2   : > { %v288_v16 = vadd.f32 %v285_v12, %v266_v6 }
  0xb3   : > { %v371_v26 = vadd.f32 %v370_v19, %v361_v23  ;;  %v263_v48 = vpop.permute.xlu0 %262 }
  0xb4   : > { %v310_v24 = vadd.f32 %v307_v14, %v288_v16 }
  0xb5   : > { %v374_v60 = vpop.permute.xlu1 %373 }
  0xb6   : > { %v380_v25 = vmul.f32 %v379_v20, %v374_v60  ;;  %v313_v30 = vmax.f32 %v310_v24, 0.0 }
  0xb8   : > { %v381_v31 = vadd.f32 %v380_v25, %v371_v26  ;;  %v409_v40 = vrot.slane %v313_v30, %v941_v33  ;;  %v419_v47 = vrot.slane %v313_v30, %v947_v39  ;;  %v429_v51 = vrot.slane %v313_v30, %v951_v42  ;;  %v300_v62 = vpop.permute.xlu0 %299 }
  0xb9   : > { %v439_v55 = vrot.slane %v313_v30, %v965_v3  ;;  %v449_v61 = vrot.slane %v313_v30, %v368_v7  ;;  %v459_v4 = vrot.slane %v313_v30, %v378_v8  ;;  %v469_v10 = vrot.slane %v313_v30, %v388_v22 }
  0xba   : > { %v394_v63 = vpop.permute.xlu1 %393  ;;  %v391_v36 = vadd.f32 %v390_v34, %v381_v31  ;;  %v420_v52 = vmul.f32 %v419_v47, %v414_v59  ;;  %v479_v15 = vrot.slane %v313_v30, %v398_v27 }
  0xbb   : > { %v400_v38 = vmul.f32 %v399_v35, %v394_v63  ;;  %v308_v63 = vmul.f32 %v957_v46, %v300_v62 }
  0xbd   : > { %v401_v45 = vadd.f32 %v400_v38, %v391_v36 }
  0xbf   : > { %v404_v9 = vpop.permute.xlu1 %403 }
  0xc0   : > { %v410_v43 = vmul.f32 %v409_v40, %v404_v9 }
  0xc2   : > { %v411_v50 = vadd.f32 %v410_v43, %v401_v45 }
  0xc4   : > { %v241_v21 = vpop.permute.xlu1 %240  ;;  %v421_v57 = vadd.f32 %v420_v52, %v411_v50 }
  0xc5   : > { %v249_v32 = vmul.f32 %v944_v37, %v241_v21 }
  0xc7   : > { %v267_v56 = vadd.f32 %v263_v48, %v249_v32 }
  0xc9   : > { %v424_v28 = vpop.permute.xlu1 %423 }
  0xca   : > { %v430_v53 = vmul.f32 %v429_v51, %v424_v28 }
  0xcc   : > { %v431_v0 = vadd.f32 %v430_v53, %v421_v57 }
  0xce   : > { %v278_v41 = vpop.permute.xlu1 %277 }
  0xcf   : > { %v286_v54 = vmul.f32 %v954_v44, %v278_v41  ;;  %v464_v44 = vpop.permute.xlu0 %463 }
  0xd0   : > { %v470_v12 = vmul.f32 %v469_v10, %v464_v44 }
  0xd1   : > { %v289_v1 = vadd.f32 %v286_v54, %v267_v56 }
  0xd3   : > { %v434_v49 = vpop.permute.xlu1 %433  ;;  %v311_v59 = vadd.f32 %v308_v63, %v289_v1  ;;  %v494_v20 = vpop.permute.xlu0 %493 }
  0xd4   : > { %v440_v58 = vmul.f32 %v439_v55, %v434_v49 }
  0xd5   : > { %v314_v13 = vmax.f32 %v311_v59, 0.0 }
  0xd6   : > { %v441_v37 = vadd.f32 %v440_v58, %v431_v0 }
  0xd7   : > { %v489_v46 = vrot.slane %v314_v13, %v941_v33  ;;  %v499_v18 = vrot.slane %v314_v13, %v947_v39  ;;  %v509_v22 = vrot.slane %v314_v13, %v951_v42  ;;  %v519_v28 = vrot.slane %v314_v13, %v965_v3 }
  0xd8   : > { %v444_v60 = vpop.permute.xlu1 %443 }
  0xd9   : > { %v450_v2 = vmul.f32 %v449_v61, %v444_v60  ;;  %v500_v23 = vmul.f32 %v499_v18, %v494_v20 }
  0xdb   : > { %v451_v6 = vadd.f32 %v450_v2, %v441_v37 }
  0xdd   : > { %v454_v5 = vpop.permute.xlu1 %453 }
  0xde   : > { %v460_v9 = vmul.f32 %v459_v4, %v454_v5 }
  0xe0   : > { %v461_v11 = vadd.f32 %v460_v9, %v451_v6 }
  0xe2   : > { %v474_v14 = vpop.permute.xlu1 %473  ;;  %v471_v7 = vadd.f32 %v470_v12, %v461_v11 }
  0xe3   : > { %v480_v16 = vmul.f32 %v479_v15, %v474_v14 }
  0xe5   : > { %v481_v19 = vadd.f32 %v480_v16, %v471_v7 }
  0xe7   : > { %v484_v17 = vpop.permute.xlu1 %483 }
  0xe8   : > { %v490_v8 = vmul.f32 %v489_v46, %v484_v17 }
  0xea   : > { %v491_v21 = vadd.f32 %v490_v8, %v481_v19 }
  0xec   : > { %v504_v24 = vpop.permute.xlu1 %503  ;;  %v501_v25 = vadd.f32 %v500_v23, %v491_v21 }
  0xed   : > { %v510_v26 = vmul.f32 %v509_v22, %v504_v24 }
  0xef   : > { %v511_v29 = vadd.f32 %v510_v26, %v501_v25 }
  0xf1   : > { %v514_v27 = vpop.permute.xlu1 %513 }
  0xf2   : > { %v520_v30 = vmul.f32 %v519_v28, %v514_v27 }
  0xf4   : > { %v521_v33 = vadd.f32 %v520_v30, %v511_v29 }
  0xf6   : > { %v523_v31 = vsel %vm522_vm0, %v521_v33, -inf }
  0xf7   : > { %v524_v34 = vrot.slane %v523_v31, 4 }
  0xf9   : > { %v525_v39 = vmax.f32 %v523_v31, %v524_v34 }
  0xfb   : > { %v526_v35 = vrot.slane %v525_v39, 2 }
  0xfd   : > { %v527_v36 = vmax.f32 %v525_v39, %v526_v35 }
  0xff   : > { %v528_v38 = vrot.slane %v527_v36, 1 }
 0x101   : > { %v529_v40 = vmax.f32 %v527_v36, %v528_v38 }
 0x103   : > { %v530_v41 = vsub.f32 %v521_v33, %v529_v40 }
 0x105   : > { %v531_v42 = vmul.f32 1.442695, %v530_v41 }
 0x107   : > { %716 = vpow2.f32 %v531_v42 }
 0x111   : > { %v717_v43 = vpop.eup %716 }
 0x112   : > { %v533_v45 = vsel %vm522_vm0, %v717_v43, 0.0 }
 0x113   : > { %v534_v3 = vrot.slane %v533_v45, 4 }
 0x115   : > { %v535_v47 = vadd.f32 %v534_v3, %v533_v45 }
 0x117   : > { %v536_v48 = vrot.slane %v535_v47, 2 }
 0x119   : > { %v537_v49 = vadd.f32 %v536_v48, %v535_v47 }
 0x11b   : > { %v538_v50 = vrot.slane %v537_v49, 1 }
 0x11d   : > { %v539_v32 = vadd.f32 %v538_v50, %v537_v49 }
 0x11f   : > { %718 = vrcp.f32 %v539_v32 }
 0x129   : > { %v719_v51 = vpop.eup %718 }
 0x12a   : > { %v542_v52 = vmul.f32 %v719_v51, %v717_v43 }
 0x12c   : > { %543 = vst [vmem:[%s215_s13] sm:$0x7] %v542_v52 }
 0x12d   : > { %733 = shalt.err (!%p730_p3)
}
 0x12e   : > { %s734_s6 = scalar_lea.hbm %s991_s17, 64  ;;  %s738_s9 = scalar_lea.hbm %s1038_s5, 128 }
 0x12f   : > { %p735_p4 = scmp.ne.s32.totalorder %s991_s17, %s734_s6  ;;  %p739_p9 = scmp.lt.u32.totalorder %s991_s17, %s1038_s5 }
 0x130   : > { %p740_p10 = scmp.lt.u32.totalorder %s738_s9, %s734_s6  ;;  %p742_p12 = scmp.lt.u32.totalorder %s734_s6, %s991_s17 }
 0x131   : > { %p736_p7 = pnand %p735_p4, %p873_p5 }
 0x132   : > { %p741_p11 = por %p740_p10, %p739_p9 }
 0x133   : > { %p737_p8 = pneg %p736_p7 }
 0x134   : > { %p743_p13 = por %p742_p12, %p741_p11 }
 0x136   : > { %p744_p0 = pnand %p743_p13, %p737_p8 }
 0x138   : > { %747 = shalt.err (!%p744_p0)
}
 0x139   : > { %627 = dma.vmem_to_hbm [thread:$0]  (%p873_p5), %s993_s14, 64, %s991_s17, %s545_s23  }
 0x13a PF: > { %p633_p1 = scmp.ge.s32.totalorder %s782_s21, 2  ;;  %s570_s12 = sand.u32 1, %s770_s18  }
 0x13b   : > { %s571_s13 = scalar_lea.sflag [#allocation3], %s570_s12 }
 0x13c   : > { %p630_p2 = pnand %p633_p1, %p877_p6 }
 0x13e   : > { %765 = dma.done.wait (!%p630_p2), %s571_s13, 64  }
 0x13f   : > { %767 = vsyncadd (!%p630_p2), %s571_s13, 4294967232  ;;  %p15_p3 = scmp.ge.s32.totalorder %s860_s24, 4   ;;  %s1041_s18 = smov %s774_s19 }
 0x140   : > { %s1042_s19 = smov %s778_s20  ;;  %s1043_s20 = smov %s871_s27 }
 0x141   : > { %s1044_s21 = smov %s860_s24  ;;  %17 = sbr.rel (!%p15_p3) target bundleno = 3 (0x3), region = 75 }
 0x148   :  { %576 = vsyncpa [#allocation3], 1 }
 0x149   :  { %578 = vsyncpa [#allocation3 + $0x1], 1 }

</bundles_post_ra>
